<compile_context>
chip_gen: v7x
topology: tpu7x:2x2x1
jax: 0.10.0
libtpu: 0.0.40
codegen_flags: <defaults>
</compile_context>

<pallas_src>
import jax
import jax.numpy as jnp
from jax.experimental import pallas as pl
from jax.experimental.pallas import tpu as pltpu

LANES = 128


def mlp_kernel(x_ref, p_ref, o_ref):
    # x_ref: (1, N_pad)   batch on the lane axis
    # p_ref: (d_hid, 4)   col0 = fc1.weight, col1 = fc1.bias,
    #                     col2 = fc2.weight, col3[0] = fc2.bias
    # o_ref: (1, N_pad)
    x = x_ref[...]                       # (1, N_pad)
    p = p_ref[...]                       # (d_hid, 4)
    w1 = p[:, 0:1]                       # (d_hid, 1)
    b1 = p[:, 1:2]                       # (d_hid, 1)
    w2 = p[:, 2:3]                       # (d_hid, 1)
    b2 = p[0:1, 3:4]                     # (1, 1)

    # fc1: Linear(1, d_hid). K=1 contraction == outer product -> pure VPU broadcast.
    h = w1 * x + b1                      # (d_hid, N_pad)

    # fc2: Linear(d_hid, 1). N_out=1 contraction == weighted sublane reduction.
    o = jnp.sum(h * w2, axis=0, keepdims=True) + b2   # (1, N_pad)

    o_ref[...] = o.astype(o_ref.dtype)


def net_forward(x, w1, b1, w2, b2):
    """Forward of Net. Parameters are in PyTorch layout:
       w1: (d_hid, 1) = fc1.weight, b1: (d_hid,) = fc1.bias,
       w2: (1, d_hid) = fc2.weight, b2: (1,)     = fc2.bias.
       x: (N, 1). Returns (N, 1)."""
    n, d_in = x.shape
    d_hid = w1.shape[0]
    d_out = w2.shape[0]
    assert d_in == 1 and w1.shape == (d_hid, d_in)
    assert d_out == 1 and w2.shape == (d_out, d_hid)
    assert b1.shape == (d_hid,) and b2.shape == (d_out,)

    n_pad = pl.cdiv(n, LANES) * LANES

    # Wrapper-side layout plumbing: batch -> lane axis, zero-padded to full lanes.
    x_lanes = jnp.zeros((d_in, n_pad), jnp.float32).at[:, :n].set(x.T)

    # Pack all four parameter tensors into one tiny VMEM array (one DMA, not four).
    params = jnp.zeros((d_hid, 4), jnp.float32)
    params = params.at[:, 0].set(w1[:, 0])
    params = params.at[:, 1].set(b1)
    params = params.at[:, 2].set(w2[0, :])
    params = params.at[0, 3].set(b2[0])

    out_lanes = pl.pallas_call(
        mlp_kernel,
        out_shape=jax.ShapeDtypeStruct((d_out, n_pad), jnp.float32),
        # No grid: single invocation, whole (tiny) arrays resident in VMEM.
        in_specs=[
            pl.BlockSpec(memory_space=pltpu.MemorySpace.VMEM),  # x slab
            pl.BlockSpec(memory_space=pltpu.MemorySpace.VMEM),  # packed params
        ],
        out_specs=pl.BlockSpec(memory_space=pltpu.MemorySpace.VMEM),
    )(x_lanes, params)

    # Back to PyTorch's (N, 1) output layout.
    return out_lanes[:, :n].T.astype(x.dtype)


def init_params(key):
    """nn.Linear-style U(-1/sqrt(fan_in), 1/sqrt(fan_in)) init, PyTorch layouts."""
    k1, k2, k3, k4 = jax.random.split(key, 4)
    d_in, d_hid, d_out = 1, 10, 1
    bound1 = 1.0 / (d_in ** 0.5)
    bound2 = 1.0 / (d_hid ** 0.5)
    w1 = jax.random.uniform(k1, (d_hid, d_in), jnp.float32, -bound1, bound1)
    b1 = jax.random.uniform(k2, (d_hid,), jnp.float32, -bound1, bound1)
    w2 = jax.random.uniform(k3, (d_out, d_hid), jnp.float32, -bound2, bound2)
    b2 = jax.random.uniform(k4, (d_out,), jnp.float32, -bound2, bound2)
    return w1, b1, w2, b2


if __name__ == "__main__":
    key = jax.random.PRNGKey(0)
    kx, kp = jax.random.split(key)

    # matches `x = torch.randn(100, 1)` from the source script
    x = jax.random.normal(kx, (100, 1), dtype=jnp.float32)
    w1, b1, w2, b2 = init_params(kp)

    out = net_forward(x, w1, b1, w2, b2)
    out = jax.block_until_ready(out)

    # pure-JAX reference (PyTorch convention: y = x @ W.T + b)
    ref = (x @ w1.T + b1) @ w2.T + b2
    assert out.shape == (100, 1)
    assert jnp.allclose(out, ref, atol=1e-5, rtol=1e-5)

    print("KERNEL_OK")
</pallas_src>

<mosaic_0001>
module attributes {stable_mosaic.version = 11 : i64} {
  func.func @mlp_kernel(%arg0: memref<1x128xf32, #tpu.memory_space<vmem>>, %arg1: memref<10x4xf32, #tpu.memory_space<vmem>>, %arg2: memref<1x128xf32, #tpu.memory_space<vmem>>) attributes {dimension_semantics = [], scalar_prefetch = 0 : i64, scratch_operands = 0 : i64, tpu.core_type = #tpu.core_type<tc>} {
    %c0 = arith.constant 0 : index
    %c0_0 = arith.constant 0 : index
    %0 = vector.load %arg0[%c0, %c0_0] : memref<1x128xf32, #tpu.memory_space<vmem>>, vector<1x128xf32>
    %c0_1 = arith.constant 0 : index
    %c0_2 = arith.constant 0 : index
    %1 = vector.load %arg1[%c0_1, %c0_2] : memref<10x4xf32, #tpu.memory_space<vmem>>, vector<10x4xf32>
    %2 = vector.extract_strided_slice %1 {offsets = [0, 0], sizes = [10, 1], strides = [1, 1]} : vector<10x4xf32> to vector<10x1xf32>
    %3 = vector.extract_strided_slice %1 {offsets = [0, 1], sizes = [10, 1], strides = [1, 1]} : vector<10x4xf32> to vector<10x1xf32>
    %4 = vector.extract_strided_slice %1 {offsets = [0, 2], sizes = [10, 1], strides = [1, 1]} : vector<10x4xf32> to vector<10x1xf32>
    %5 = vector.extract_strided_slice %1 {offsets = [0, 3], sizes = [1, 1], strides = [1, 1]} : vector<10x4xf32> to vector<1x1xf32>
    %6 = vector.broadcast %2 : vector<10x1xf32> to vector<10x128xf32>
    %7 = vector.broadcast %0 : vector<1x128xf32> to vector<10x128xf32>
    %8 = arith.mulf %6, %7 : vector<10x128xf32>
    %9 = vector.broadcast %3 : vector<10x1xf32> to vector<10x128xf32>
    %10 = arith.addf %8, %9 : vector<10x128xf32>
    %11 = vector.broadcast %4 : vector<10x1xf32> to vector<10x128xf32>
    %12 = arith.mulf %10, %11 : vector<10x128xf32>
    %cst = arith.constant dense<0.000000e+00> : vector<128xf32>
    %13 = vector.multi_reduction <add>, %12, %cst [0] : vector<10x128xf32> to vector<128xf32>
    %14 = vector.shape_cast %13 : vector<128xf32> to vector<1x128xf32>
    %15 = vector.broadcast %5 : vector<1x1xf32> to vector<1x128xf32>
    %16 = arith.addf %14, %15 : vector<1x128xf32>
    %c0_3 = arith.constant 0 : index
    %c0_4 = arith.constant 0 : index
    %17 = vector.load %arg2[%c0_3, %c0_4] : memref<1x128xf32, #tpu.memory_space<vmem>>, vector<1x128xf32>
    tpu.vector_store %arg2[%c0_3, %c0_4], %16 {strides = array<i32>} : memref<1x128xf32, #tpu.memory_space<vmem>>, vector<1x128xf32>,
    return
  }
}

</mosaic_0001>

<bundles_post_ra>
// kernel: tpu_custom_call.1
= control target key start
LH: loop header
LB: loop body
LE: loop exit
PB: predicated region body
PF: predicated region fallthrough
CT: control target
= control target key end

     0   :  { %v118_v1 = vmov 1   ;;  %v119_v2 = vmov 0   ;;  %s159_s0 = inlined_call_operand.vmem [shape: f32[1,128], index: 0, kind: input, shape index: {}]   ;;  %s160_s1 = inlined_call_operand.vmem [shape: f32[10,4], index: 1, kind: input, shape index: {}]   ;;  %s161_s2 = inlined_call_operand.hbm [shape: f32[1,128], index: 2, kind: output, shape index: {}]  }
   0x1   :  { %v14_v0 = vld [vmem:[%s160_s1 + $0x8] sm:$0x3]  ;;  %89 = vset.pattern.permute.xlu1 %v118_v1  ;;  %88 = vset.pattern.permute.xlu0 %v119_v2 }
   0x2   :  { %7 = vsyncpa [#allocation3], 0  ;;  %38 = vperm.xlu1 %89, %v14_v0   ;;  %22 = vperm.xlu0 %88, %v14_v0   ;;  %v13_v3 = vld [vmem:[%s160_s1] sm:$0xff]  ;;  %v120_v4 = vmov 2   ;;  %v121_v5 = vmov 3   ;;  %vm53_vm0 = vcmask 1041408  }
   0x3   :  { %v82_v8 = vld [vmem:[%s159_s0] ss:$0 sm:$0xff]  ;;  %s122_s0 = smov [#allocation2]  }
   0x4   :  { %s74_s1 = sshll.u32 %s122_s0, 4  ;;  %s75_s1 = int_to_ptr.vmem [resolvable:$true] %s74_s1 }
   0x5   :  { %s94_s15 = scalar_lea.vmem %s75_s1, 16  ;;  %s98_s16 = scalar_lea.vmem %s75_s1, 32 }
   0x6   :  { %34 = vperm.xlu1 %89, %v13_v3   ;;  %17 = vperm.xlu0 %88, %v13_v3   ;;  %p95_p0 = scmp.ne.s32.totalorder %s75_s1, %s94_s15  ;;  %p99_p1 = scmp.lt.s32.totalorder %s75_s1, %s75_s1 }
   0x7   :  { %p100_p2 = scmp.lt.s32.totalorder %s98_s16, %s94_s15 }
   0x9   :  { %p101_p3 = por %p100_p2, %p99_p1 }
   0xa   :  { %91 = vset.pattern.permute.xlu1 %v120_v4  ;;  %90 = vset.pattern.permute.xlu0 %v120_v4 }
   0xb   :  { %44 = vperm.xlu1 %91, %v13_v3   ;;  %48 = vperm.xlu0 %90, %v14_v0   ;;  %p102_p4 = pnand %p101_p3, %p95_p0 }
   0xf   :  { %92 = vset.pattern.permute.xlu1 %v121_v5  ;;  %93 = vset.pattern.permute.xlu0 %v121_v5 }
  0x10   :  { %63 = vperm.xlu1 %92, %v13_v3  }
  0x81   :  { %v39_v6 = vpop.permute.xlu1 %38  ;;  %v23_v7 = vpop.permute.xlu0 %22 }
  0x82   :  { %v32_v9 = vmul.f32 %v82_v8, %v23_v7 }
  0x84   :  { %v42_v14 = vadd.f32 %v39_v6, %v32_v9 }
  0x85   :  { %v35_v10 = vpop.permute.xlu1 %34  ;;  %v18_v11 = vpop.permute.xlu0 %17 }
  0x86   :  { %v31_v12 = vmul.f32 %v82_v8, %v18_v11 }
  0x88   :  { %v41_v13 = vadd.f32 %v35_v10, %v31_v12 }
  0x8a   :  { %v45_v15 = vpop.permute.xlu1 %44  ;;  %v49_v16 = vpop.permute.xlu0 %48 }
  0x8b   :  { %v51_v17 = vmul.f32 %v45_v15, %v41_v13  ;;  %v52_v18 = vmul.f32 %v49_v16, %v42_v14 }
  0x8d   :  { %v54_v19 = vsel %vm53_vm0, %v52_v18, 0.0 }
  0x8e   :  { %v55_v20 = vadd.f32 %v54_v19, %v51_v17 }
  0x8f   :  { %v64_v26 = vpop.permute.xlu1 %63 }
  0x90   :  { %v56_v21 = vrot.slane %v55_v20, 4 }
  0x92   :  { %v57_v22 = vadd.f32 %v56_v21, %v55_v20 }
  0x94   :  { %v58_v23 = vrot.slane %v57_v22, 2 }
  0x96   :  { %v59_v24 = vadd.f32 %v58_v23, %v57_v22 }
  0x98   :  { %v60_v25 = vrot.slane %v59_v24, 1 }
  0x9a   :  { %v61_v27 = vadd.f32 %v60_v25, %v59_v24 }
  0x9c   :  { %v66_v28 = vadd.f32 %v64_v26, %v61_v27 }
  0x9e   :  { %67 = vst [vmem:[#allocation2] sm:$0x1] %v66_v28 }
  0x9f   :  { %105 = shalt.err (!%p102_p4)
}
  0xa0   :  { %s106_s19 = scalar_lea.hbm %s161_s2, 16 }
  0xa1   :  { %p107_p5 = scmp.ne.s32.totalorder %s161_s2, %s106_s19  ;;  %p110_p6 = scmp.lt.u32.totalorder %s106_s19, %s161_s2 }
  0xa3   :  { %p112_p7 = pnand %p110_p6, %p107_p5 }
  0xa5   :  { %115 = shalt.err (!%p112_p7)
}
  0xa6   :  { %77 = dma.vmem_to_hbm [thread:$0]  %s75_s1, 16, %s161_s2, [#allocation3]  }
  0xa7   :  { %116 = dma.done.wait [#allocation3], 16  }
  0xa8   :  { %117 = vsyncadd [#allocation3], 4294967280 }
  0xa9   :  { %81 = vsyncpa [#allocation3], 1 }

</bundles_post_ra>
